<compile_context>
chip_gen: v7x
topology: tpu7x:2x2x1
jax: 0.10.0
libtpu: 0.0.40
codegen_flags: <defaults>
</compile_context>

<pallas_src>
import functools
import math

import jax
import jax.numpy as jnp
from jax.experimental import pallas as pl
from jax.experimental.pallas import tpu as pltpu

_LOG_2PI = math.log(2.0 * math.pi)


def _round_up(x, m):
    return (x + m - 1) // m * m


def _cdiv(a, b):
    return -(-a // b)


# ---------------------------------------------------------------------------
# Kernel
# ---------------------------------------------------------------------------
def ppo_packed_kernel(inp_ref, w1_ref, w2_ref, w3_ref, dist_ref, out_ref,
                      *, S, H, A):
    f32 = jnp.float32

    # Packed parameter slabs: rows [0:fan_in] = W, row [fan_in] = bias.
    w1 = w1_ref[0:S, :]                   # (S, H)
    b1 = w1_ref[S:S + 1, :]               # (1, H)
    w2 = w2_ref[0:H, :]                   # (H, 2H)   = [w_v | w_p]
    b2 = w2_ref[H:H + 1, :]               # (1, 2H)
    w3 = w3_ref[0:2 * H, :]               # (2H, A+1) block-diag head
    b3 = w3_ref[2 * H:2 * H + 1, :]       # (1, A+1)

    # Batch-invariant distribution terms (precomputed in the wrapper).
    sigma = dist_ref[0:1, :]              # (1, A)  softplus(std)
    inv_two_var = dist_ref[1:2, :]        # (1, A)  1 / (2 * sigma^2)
    logp_const = dist_ref[2:3, 0:1]       # (1, 1)  sum(log sigma) + A/2*log(2pi)

    # Fused input slab: [state | noise].
    state = inp_ref[:, 0:S]               # (TILE_B, S)
    noise = inp_ref[:, S:S + A]           # (TILE_B, A)

    # Shared trunk.
    x = jnp.tanh(jnp.dot(state, w1, preferred_element_type=f32) + b1)

    # Fused value/policy hidden layers: h = [tanh(x@Wv+bv) | tanh(x@Wp+bp)].
    h = jnp.tanh(jnp.dot(x, w2, preferred_element_type=f32) + b2)

    # Fused heads (block-diagonal): cols 0:A -> mu pre-activation, col A -> V.
    head = jnp.dot(h, w3, preferred_element_type=f32) + b3
    mu = jnp.tanh(head[:, 0:A])
    V = head[:, A:A + 1]

    # Normal(mu, sigma): reparameterized sample, clamp, log_prob at the
    # clamped action (matches the reference semantics).
    action = jnp.clip(mu + sigma * noise, -1.0, 1.0)
    diff = action - mu
    logp = (-jnp.sum(diff * diff * inv_two_var, axis=-1, keepdims=True)
            - logp_const)

    # Direct slice stores into the 16-lane packed output slab
    # [action | mu | logp | V | (unwritten pad)].
    out_ref[:, 0:A] = action
    out_ref[:, A:2 * A] = mu
    out_ref[:, 2 * A:2 * A + 1] = logp
    out_ref[:, 2 * A + 1:2 * A + 2] = V


# ---------------------------------------------------------------------------
# Parameter packing (done once in the wrapper)
# ---------------------------------------------------------------------------
def _pack_linear(w, b, row_pad_to=8):
    """Stack [W ; b] vertically, pad rows to a multiple of `row_pad_to`."""
    fan_in, fan_out = w.shape
    rows = _round_up(fan_in + 1, row_pad_to)
    slab = jnp.zeros((rows, fan_out), jnp.float32)
    slab = slab.at[:fan_in, :].set(w)
    slab = slab.at[fan_in, :].set(b.reshape(-1))
    return slab


def pack_params(p):
    """Fuse the 11 per-layer tensors into 3 weight slabs + 1 tiny dist slab."""
    S, H = p["w_sh"].shape
    A = p["w_mu"].shape[1]

    w1 = _pack_linear(p["w_sh"], p["b_sh"])                     # (pad(S+1), H)

    w_vp = jnp.concatenate([p["w_v"], p["w_p"]], axis=1)        # (H, 2H)
    b_vp = jnp.concatenate([p["b_v"], p["b_p"]], axis=1)        # (1, 2H)
    w2 = _pack_linear(w_vp, b_vp)                               # (pad(H+1), 2H)

    # Block-diagonal head: rows 0:H (value hidden) feed col A (V);
    #                      rows H:2H (policy hidden) feed cols 0:A (mu).
    w_head = jnp.zeros((2 * H, A + 1), jnp.float32)
    w_head = w_head.at[H:, :A].set(p["w_mu"])
    w_head = w_head.at[:H, A:].set(p["w_c"])
    b_head = jnp.concatenate([p["b_mu"], p["b_c"]], axis=1)     # (1, A+1)
    w3 = _pack_linear(w_head, b_head)                           # (pad(2H+1), A+1)

    # Batch-invariant distribution terms, computed once (stable softplus).
    sigma = jax.nn.softplus(p["std"])                           # (1, A)
    log_sigma = jnp.log(sigma)
    inv_two_var = 1.0 / (2.0 * sigma * sigma)
    logp_const = jnp.sum(log_sigma) + 0.5 * A * _LOG_2PI        # scalar

    dist = jnp.zeros((8, A), jnp.float32)
    dist = dist.at[0].set(sigma[0])
    dist = dist.at[1].set(inv_two_var[0])
    dist = dist.at[2, 0].set(logp_const)
    return w1, w2, w3, dist, sigma, log_sigma


# ---------------------------------------------------------------------------
# Wrapper
# ---------------------------------------------------------------------------
def ppo_forward(state, noise, params, *, tile_b=2048):
    B, S = state.shape
    H = params["w_sh"].shape[1]
    A = params["w_mu"].shape[1]
    out_lanes = _round_up(2 * A + 2, 8)         # 16 lanes for A=4

    w1, w2, w3, dist, sigma, log_sigma = pack_params(params)

    # Fuse the two lane-narrow inputs into one (B, S+A) slab.
    inp = jnp.concatenate([state.astype(jnp.float32),
                           noise.astype(jnp.float32)], axis=1)

    # Adaptive batch tiling:
    #   * cap TILE_B at `tile_b` (keeps double-buffered VMEM well under the
    #     default scoped limit on v5e/v6e/v7x),
    #   * force >= 2 grid steps for non-tiny batches so "parallel" shards
    #     across both TensorCores on v7x,
    #   * TILE_B ~ ceil(B / n_tiles) so padding waste stays < 1 tile.
    n_tiles = max(_cdiv(B, tile_b), 1)
    if B > 256 and n_tiles < 2:
        n_tiles = 2
    TILE_B = _round_up(_cdiv(B, n_tiles), 8)
    grid = _cdiv(B, TILE_B)
    B_pad = grid * TILE_B
    if B_pad != B:
        inp = jnp.pad(inp, ((0, B_pad - B), (0, 0)))

    kernel = functools.partial(ppo_packed_kernel, S=S, H=H, A=A)

    packed = pl.pallas_call(
        kernel,
        out_shape=jax.ShapeDtypeStruct((B_pad, out_lanes), jnp.float32),
        grid_spec=pltpu.PrefetchScalarGridSpec(
            num_scalar_prefetch=0,
            grid=(grid,),
            in_specs=[
                pl.BlockSpec((TILE_B, S + A), lambda i: (i, 0)),  # fused input
                pl.BlockSpec(w1.shape, lambda i: (0, 0)),         # weight slabs
                pl.BlockSpec(w2.shape, lambda i: (0, 0)),         #   resident
                pl.BlockSpec(w3.shape, lambda i: (0, 0)),         #   across grid
                pl.BlockSpec(dist.shape, lambda i: (0, 0)),
            ],
            out_specs=pl.BlockSpec((TILE_B, out_lanes), lambda i: (i, 0)),
        ),
        compiler_params=pltpu.CompilerParams(
            dimension_semantics=("parallel",)),
    )(inp, w1, w2, w3, dist)

    packed = packed[:B]
    action = packed[:, :A]
    mu = packed[:, A:2 * A]
    logp = packed[:, 2 * A:2 * A + 1]
    V = packed[:, 2 * A + 1:2 * A + 2]

    # Entropy depends only on std -> computed in the wrapper and broadcast.
    ent = jnp.broadcast_to(
        jnp.sum(0.5 + 0.5 * _LOG_2PI + log_sigma, axis=-1, keepdims=True),
        (B, 1))
    return action, logp, ent, V, mu, sigma


# ---------------------------------------------------------------------------
# Parameter init (PyTorch nn.Linear default) and pure-JAX reference
# ---------------------------------------------------------------------------
def init_linear(key, fan_in, fan_out):
    kw, kb = jax.random.split(key)
    bound = 1.0 / math.sqrt(fan_in)
    w = jax.random.uniform(kw, (fan_in, fan_out), jnp.float32, -bound, bound)
    b = jax.random.uniform(kb, (1, fan_out), jnp.float32, -bound, bound)
    return w, b


def make_params(key, state_dims, action_dims, shared_h, value_h, policy_h):
    ks = jax.random.split(key, 5)
    w_sh, b_sh = init_linear(ks[0], state_dims, shared_h)
    w_v, b_v = init_linear(ks[1], shared_h, value_h)
    w_p, b_p = init_linear(ks[2], shared_h, policy_h)
    w_c, b_c = init_linear(ks[3], value_h, 1)
    w_mu, b_mu = init_linear(ks[4], policy_h, action_dims)
    std = jnp.zeros((1, action_dims), jnp.float32)   # nn.Parameter(zeros(A))
    return dict(w_sh=w_sh, b_sh=b_sh, w_v=w_v, b_v=b_v, w_p=w_p, b_p=b_p,
                w_c=w_c, b_c=b_c, w_mu=w_mu, b_mu=b_mu, std=std)


def reference_forward(state, noise, p):
    """Pure-JAX reference of the PyTorch forward (sampling path, action=None)."""
    x = jnp.tanh(state @ p["w_sh"] + p["b_sh"])
    vh = jnp.tanh(x @ p["w_v"] + p["b_v"])
    ph = jnp.tanh(x @ p["w_p"] + p["b_p"])
    V = vh @ p["w_c"] + p["b_c"]
    mu = jnp.tanh(ph @ p["w_mu"] + p["b_mu"])
    sigma = jax.nn.softplus(p["std"])
    action = jnp.clip(mu + sigma * noise, -1.0, 1.0)
    logp = jnp.sum(-((action - mu) ** 2) / (2 * sigma ** 2)
                   - jnp.log(sigma) - 0.5 * _LOG_2PI, axis=-1, keepdims=True)
    ent = jnp.broadcast_to(
        jnp.sum(0.5 + 0.5 * _LOG_2PI + jnp.log(sigma), axis=-1, keepdims=True),
        (state.shape[0], 1))
    return action, logp, ent, V, mu, sigma


if __name__ == "__main__":
    # Small, module-consistent sizes: state_dims=16, action_dims=4,
    # one shared / value / policy hidden layer of 32 units.
    S, A, H = 16, 4, 32
    key = jax.random.PRNGKey(0)
    k_param, k_state, k_noise = jax.random.split(key, 3)
    params = make_params(k_param, S, A, H, H, H)

    # Check 1: tiny batch (single grid step).
    B = 8
    state = jax.random.normal(k_state, (B, S), jnp.float32)
    noise = jax.random.normal(k_noise, (B, A), jnp.float32)
    outs = jax.block_until_ready(ppo_forward(state, noise, params))
    ref = reference_forward(state, noise, params)
    for got, want in zip(outs, ref):
        assert got.shape == want.shape, (got.shape, want.shape)
        assert jnp.allclose(got, want, atol=1e-5, rtol=1e-5)

    # Check 2: larger non-tile-aligned batch -> 2 grid steps (v7x megacore
    # path) + adaptive tiling.
    B2 = 1040
    state2 = jax.random.normal(k_state, (B2, S), jnp.float32)
    noise2 = jax.random.normal(k_noise, (B2, A), jnp.float32)
    outs2 = jax.block_until_ready(ppo_forward(state2, noise2, params))
    ref2 = reference_forward(state2, noise2, params)
    for got, want in zip(outs2, ref2):
        assert got.shape == want.shape, (got.shape, want.shape)
        assert jnp.allclose(got, want, atol=1e-5, rtol=1e-5)

    print("KERNEL_OK")
</pallas_src>

<mosaic_0001>
module attributes {stable_mosaic.version = 11 : i64} {
  func.func @ppo_packed_kernel(%arg0: i32, %arg1: memref<8x20xf32, #tpu.memory_space<vmem>>, %arg2: memref<24x32xf32, #tpu.memory_space<vmem>>, %arg3: memref<40x64xf32, #tpu.memory_space<vmem>>, %arg4: memref<72x5xf32, #tpu.memory_space<vmem>>, %arg5: memref<8x4xf32, #tpu.memory_space<vmem>>, %arg6: memref<8x16xf32, #tpu.memory_space<vmem>>) attributes {dimension_semantics = [#tpu.dimension_semantics<parallel>], iteration_bounds = array<i64: 1>, scalar_prefetch = 0 : i64, scratch_operands = 0 : i64, tpu.core_type = #tpu.core_type<tc>, window_params = [{transform_indices = @transform_0, window_bounds = array<i64: 8, 20>}, {pipeline_mode = #tpu.pipeline_mode<synchronous>, transform_indices = @transform_1, window_bounds = array<i64: 24, 32>}, {pipeline_mode = #tpu.pipeline_mode<synchronous>, transform_indices = @transform_2, window_bounds = array<i64: 40, 64>}, {pipeline_mode = #tpu.pipeline_mode<synchronous>, transform_indices = @transform_3, window_bounds = array<i64: 72, 5>}, {pipeline_mode = #tpu.pipeline_mode<synchronous>, transform_indices = @transform_4, window_bounds = array<i64: 8, 4>}, {transform_indices = @transform_5, window_bounds = array<i64: 8, 16>}]} {
    %c0 = arith.constant 0 : index
    %c0_0 = arith.constant 0 : index
    %0 = vector.load %arg2[%c0, %c0_0] : memref<24x32xf32, #tpu.memory_space<vmem>>, vector<16x32xf32>
    %c16 = arith.constant 16 : index
    %c0_1 = arith.constant 0 : index
    %1 = vector.load %arg2[%c16, %c0_1] : memref<24x32xf32, #tpu.memory_space<vmem>>, vector<1x32xf32>
    %c0_2 = arith.constant 0 : index
    %c0_3 = arith.constant 0 : index
    %2 = vector.load %arg3[%c0_2, %c0_3] : memref<40x64xf32, #tpu.memory_space<vmem>>, vector<32x64xf32>
    %c32 = arith.constant 32 : index
    %c0_4 = arith.constant 0 : index
    %3 = vector.load %arg3[%c32, %c0_4] : memref<40x64xf32, #tpu.memory_space<vmem>>, vector<1x64xf32>
    %c0_5 = arith.constant 0 : index
    %c0_6 = arith.constant 0 : index
    %4 = vector.load %arg4[%c0_5, %c0_6] : memref<72x5xf32, #tpu.memory_space<vmem>>, vector<64x5xf32>
    %c64 = arith.constant 64 : index
    %c0_7 = arith.constant 0 : index
    %5 = vector.load %arg4[%c64, %c0_7] : memref<72x5xf32, #tpu.memory_space<vmem>>, vector<1x5xf32>
    %c0_8 = arith.constant 0 : index
    %c0_9 = arith.constant 0 : index
    %6 = vector.load %arg5[%c0_8, %c0_9] : memref<8x4xf32, #tpu.memory_space<vmem>>, vector<1x4xf32>
    %c1 = arith.constant 1 : index
    %c0_10 = arith.constant 0 : index
    %7 = vector.load %arg5[%c1, %c0_10] : memref<8x4xf32, #tpu.memory_space<vmem>>, vector<1x4xf32>
    %c2 = arith.constant 2 : index
    %c0_11 = arith.constant 0 : index
    %8 = vector.load %arg5[%c2, %c0_11] : memref<8x4xf32, #tpu.memory_space<vmem>>, vector<1x1xf32>
    %c0_12 = arith.constant 0 : index
    %c0_13 = arith.constant 0 : index
    %9 = vector.load %arg1[%c0_12, %c0_13] : memref<8x20xf32, #tpu.memory_space<vmem>>, vector<8x16xf32>
    %c0_14 = arith.constant 0 : index
    %c16_15 = arith.constant 16 : index
    %10 = vector.load %arg1[%c0_14, %c16_15] : memref<8x20xf32, #tpu.memory_space<vmem>>, vector<8x4xf32>
    %cst = arith.constant dense<0.000000e+00> : vector<8x32xf32>
    %11 = tpu.matmul %9, %0, %cst {dimension_numbers = #tpu.dot_dimension_numbers<[1], [0], [0], [1], [0, 0, 1, 1], [], []>} : vector<8x16xf32>, vector<16x32xf32>, vector<8x32xf32> -> vector<8x32xf32>
    %12 = vector.broadcast %1 : vector<1x32xf32> to vector<8x32xf32>
    %13 = arith.addf %11, %12 : vector<8x32xf32>
    %14 = math.tanh %13 : vector<8x32xf32>
    %cst_16 = arith.constant dense<0.000000e+00> : vector<8x64xf32>
    %15 = tpu.matmul %14, %2, %cst_16 {dimension_numbers = #tpu.dot_dimension_numbers<[1], [0], [0], [1], [0, 0, 1, 1], [], []>} : vector<8x32xf32>, vector<32x64xf32>, vector<8x64xf32> -> vector<8x64xf32>
    %16 = vector.broadcast %3 : vector<1x64xf32> to vector<8x64xf32>
    %17 = arith.addf %15, %16 : vector<8x64xf32>
    %18 = math.tanh %17 : vector<8x64xf32>
    %cst_17 = arith.constant dense<0.000000e+00> : vector<8x5xf32>
    %19 = tpu.matmul %18, %4, %cst_17 {dimension_numbers = #tpu.dot_dimension_numbers<[1], [0], [0], [1], [0, 0, 1, 1], [], []>} : vector<8x64xf32>, vector<64x5xf32>, vector<8x5xf32> -> vector<8x5xf32>
    %20 = vector.broadcast %5 : vector<1x5xf32> to vector<8x5xf32>
    %21 = arith.addf %19, %20 : vector<8x5xf32>
    %22 = vector.extract_strided_slice %21 {offsets = [0, 0], sizes = [8, 4], strides = [1, 1]} : vector<8x5xf32> to vector<8x4xf32>
    %23 = math.tanh %22 : vector<8x4xf32>
    %24 = vector.extract_strided_slice %21 {offsets = [0, 4], sizes = [8, 1], strides = [1, 1]} : vector<8x5xf32> to vector<8x1xf32>
    %25 = vector.broadcast %6 : vector<1x4xf32> to vector<8x4xf32>
    %26 = arith.mulf %25, %10 : vector<8x4xf32>
    %27 = arith.addf %23, %26 : vector<8x4xf32>
    %cst_18 = arith.constant -1.000000e+00 : f32
    %cst_19 = arith.constant 1.000000e+00 : f32
    %28 = vector.broadcast %cst_18 : f32 to vector<8x4xf32>
    %29 = arith.maximumf %28, %27 : vector<8x4xf32>
    %30 = vector.broadcast %cst_19 : f32 to vector<8x4xf32>
    %31 = arith.minimumf %30, %29 : vector<8x4xf32>
    %32 = arith.subf %31, %23 : vector<8x4xf32>
    %33 = arith.mulf %32, %32 : vector<8x4xf32>
    %34 = vector.broadcast %7 : vector<1x4xf32> to vector<8x4xf32>
    %35 = arith.mulf %33, %34 : vector<8x4xf32>
    %cst_20 = arith.constant dense<0.000000e+00> : vector<8xf32>
    %36 = vector.multi_reduction <add>, %35, %cst_20 [1] : vector<8x4xf32> to vector<8xf32>
    %37 = vector.shape_cast %36 : vector<8xf32> to vector<8x1xf32>
    %cst_21 = arith.constant 0.000000e+00 : f32
    %38 = vector.broadcast %cst_21 : f32 to vector<8x1xf32>
    %39 = arith.subf %38, %37 : vector<8x1xf32>
    %40 = vector.broadcast %8 : vector<1x1xf32> to vector<8x1xf32>
    %41 = arith.subf %39, %40 : vector<8x1xf32>
    %c0_22 = arith.constant 0 : index
    %c0_23 = arith.constant 0 : index
    %42 = vector.load %arg6[%c0_22, %c0_23] : memref<8x16xf32, #tpu.memory_space<vmem>>, vector<8x4xf32>
    tpu.vector_store %arg6[%c0_22, %c0_23], %31 {strides = array<i32>} : memref<8x16xf32, #tpu.memory_space<vmem>>, vector<8x4xf32>,
    %c0_24 = arith.constant 0 : index
    %c4 = arith.constant 4 : index
    %43 = vector.load %arg6[%c0_24, %c4] : memref<8x16xf32, #tpu.memory_space<vmem>>, vector<8x4xf32>
    tpu.vector_store %arg6[%c0_24, %c4], %23 {strides = array<i32>} : memref<8x16xf32, #tpu.memory_space<vmem>>, vector<8x4xf32>,
    %c0_25 = arith.constant 0 : index
    %c8 = arith.constant 8 : index
    %44 = vector.load %arg6[%c0_25, %c8] : memref<8x16xf32, #tpu.memory_space<vmem>>, vector<8x1xf32>
    tpu.vector_store %arg6[%c0_25, %c8], %41 {strides = array<i32>} : memref<8x16xf32, #tpu.memory_space<vmem>>, vector<8x1xf32>,
    %c0_26 = arith.constant 0 : index
    %c9 = arith.constant 9 : index
    %45 = vector.load %arg6[%c0_26, %c9] : memref<8x16xf32, #tpu.memory_space<vmem>>, vector<8x1xf32>
    tpu.vector_store %arg6[%c0_26, %c9], %24 {strides = array<i32>} : memref<8x16xf32, #tpu.memory_space<vmem>>, vector<8x1xf32>,
    return
  }
  func.func @transform_0(%arg0: i32) -> (i32, i32) {
    %c0_i32 = arith.constant 0 : i32
    %c0_i32_0 = arith.constant 0 : i32
    return %arg0, %c0_i32 : i32, i32
  }
  func.func @transform_1(%arg0: i32) -> (i32, i32) {
    %c0_i32 = arith.constant 0 : i32
    %c0_i32_0 = arith.constant 0 : i32
    %c0_i32_1 = arith.constant 0 : i32
    return %c0_i32, %c0_i32_0 : i32, i32
  }
  func.func @transform_2(%arg0: i32) -> (i32, i32) {
    %c0_i32 = arith.constant 0 : i32
    %c0_i32_0 = arith.constant 0 : i32
    %c0_i32_1 = arith.constant 0 : i32
    return %c0_i32, %c0_i32_0 : i32, i32
  }
  func.func @transform_3(%arg0: i32) -> (i32, i32) {
    %c0_i32 = arith.constant 0 : i32
    %c0_i32_0 = arith.constant 0 : i32
    %c0_i32_1 = arith.constant 0 : i32
    return %c0_i32, %c0_i32_0 : i32, i32
  }
  func.func @transform_4(%arg0: i32) -> (i32, i32) {
    %c0_i32 = arith.constant 0 : i32
    %c0_i32_0 = arith.constant 0 : i32
    %c0_i32_1 = arith.constant 0 : i32
    return %c0_i32, %c0_i32_0 : i32, i32
  }
  func.func @transform_5(%arg0: i32) -> (i32, i32) {
    %c0_i32 = arith.constant 0 : i32
    %c0_i32_0 = arith.constant 0 : i32
    return %arg0, %c0_i32 : i32, i32
  }
}

</mosaic_0001>

<bundles_post_ra>
// kernel: tpu_custom_call.1
= control target key start
LH: loop header
LB: loop body
LE: loop exit
PB: predicated region body
PF: predicated region fallthrough
CT: control target
= control target key end

     0   :  { %v463_v2 = vmov 0.0|0.0   ;;  %vm464_vm0 = vmmov 0   ;;  %v465_v4 = vmov 0.0   ;;  %s576_s0 = inlined_call_operand.vmem [shape: f32[8,20], index: 0, kind: input, shape index: {}]   ;;  %s577_s1 = inlined_call_operand.vmem [shape: f32[24,32], index: 1, kind: input, shape index: {}]   ;;  %s578_s2 = inlined_call_operand.vmem [shape: f32[40,64], index: 2, kind: input, shape index: {}]   ;;  %s579_s3 = inlined_call_operand.vmem [shape: f32[72,5], index: 3, kind: input, shape index: {}]   ;;  %s580_s4 = inlined_call_operand.vmem [shape: f32[8,4], index: 4, kind: input, shape index: {}]   ;;  %s581_s5 = inlined_call_operand.hbm [shape: f32[8,16], index: 5, kind: output, shape index: {}]  }
   0x1   :  { %v21_v0 = vld [vmem:[%s577_s1] sm:$0xff]  ;;  %v22_v1 = vld [vmem:[%s577_s1 + $0x8] sm:$0xff]  ;;  %404 = vmatprep.subr.bf16.mxu1 %v463_v2  ;;  %371 = vmatprep.mubr.msk.f32.mxu1 %vm464_vm0, %v465_v4 }
   0x2   :  { %v405_v3 = vpack.c.bf16 %v22_v1, %v21_v0 }
   0x3   :  { %10 = vsyncpa [#allocation3], 0  ;;  %413 = vmatprep.subr.bf16.mxu0 %v463_v2  ;;  %401 = vmatprep.mubr.msk.f32.mxu0 %vm464_vm0, %v465_v4  ;;  %v41_v5 = vld [vmem:[%s576_s0] sm:$0xff]  ;;  %vm46_vm1 = vcmask 130048   ;;  %v25_v7 = vld [vmem:[%s578_s2 + $0x8] sm:$0xff]  ;;  %vm125_vm2 = vcmask 261120  }
   0x4   :  { %406 = vmatpush3.bf16.msra.mxu1 %v405_v3  ;;  %v24_v6 = vld [vmem:[%s578_s2] sm:$0xff]  ;;  %v26_v8 = vld [vmem:[%s578_s2 + $0x10] sm:$0xff]  ;;  %v27_v10 = vld [vmem:[%s578_s2 + $0x18] sm:$0xff]  ;;  %s466_s23 = smov 112   ;;  %vm204_vm3 = vcmask 523264   ;;  %vm297_vm4 = vcmask 31744  }
   0x5   :  { %407 = vmatprep.subr.bf16.mxu1 %v463_v2  ;;  %v408_v9 = vpack.c.bf16 %v25_v7, %v24_v6  ;;  %v411_v11 = vpack.c.bf16 %v27_v10, %v26_v8  ;;  %v29_v12 = vld [vmem:[%s579_s3] sm:$0xff]  ;;  %v30_v13 = vld [vmem:[%s579_s3 + $0x8] sm:$0xff]  ;;  %v340_v15 = vld [vmem:[%s577_s1 + $0x10] ss:$0 sm:$0xff]  ;;  %283 = vrot.lane.b32.xlu0 %v41_v5, %s466_s23  ;;  %vm312_vm5 = vcmask 64544   ;;  %s468_s7 = smov 8  }
   0x6   :  { %v414_v14 = vpack.c.bf16 %v30_v13, %v29_v12  ;;  %v31_v20 = vld [vmem:[%s579_s3 + $0x10] sm:$0xff]  ;;  %v32_v21 = vld [vmem:[%s579_s3 + $0x18] sm:$0xff]  ;;  %v33_v23 = vld [vmem:[%s579_s3 + $0x20] sm:$0xff]  ;;  %s469_s8 = smov 5   ;;  %vm318_vm6 = vcmask 72768   ;;  %s470_s9 = smov [#allocation2]  }
   0x7   :  { %372 = vmatmul.mubr.msk.f32.vlgmr.msra.gmra.mrb[0].mxu1 %vm46_vm1, %v41_v5  ;;  %v417_v22 = vpack.c.bf16 %v32_v21, %v31_v20  ;;  %v34_v24 = vld [vmem:[%s579_s3 + $0x28] sm:$0xff]  ;;  %v35_v26 = vld [vmem:[%s579_s3 + $0x30] sm:$0xff]  ;;  %v36_v27 = vld [vmem:[%s579_s3 + $0x38] sm:$0xff]  ;;  %s332_s10 = sshll.u32 %s470_s9, 4  ;;  %vm324_vm7 = vcmask 80968   ;;  %s333_s10 = int_to_ptr.vmem [resolvable:$true] %s332_s10 }
   0x8   :  { %382 = vmatprep.mubr.msk.f32.mxu1 %vm464_vm0, %v465_v4  ;;  %409 = vmatpush3.bf16.msra.mxu1 %v408_v9  ;;  %v420_v25 = vpack.c.bf16 %v34_v24, %v33_v23  ;;  %v423_v28 = vpack.c.bf16 %v36_v27, %v35_v26  ;;  %v342_v29 = vld [vmem:[%s578_s2 + $0x20] ss:$0 sm:$0xff]  ;;  %s467_s2 = smov 4   ;;  %v348_v45 = vld [vmem:[%s580_s4 + $0x1] ss:$0 sm:$0xff]  ;;  %s439_s11 = scalar_lea.vmem %s333_s10, 128 }
   0x9   :  { %410 = vmatprep.subr.bf16.mxu1 %v463_v2  ;;  %415 = vmatpush3.bf16.msra.mxu0 %v414_v14  ;;  %v344_v34 = vld [vmem:[%s579_s3 + $0x40] ss:$0 sm:$0xff]  ;;  %v349_v50 = vld [vmem:[%s580_s4 + $0x2] ss:$0 sm:$0xff]  ;;  %p440_p0 = scmp.ne.s32.totalorder %s333_s10, %s439_s11  ;;  %p444_p1 = scmp.lt.s32.totalorder %s333_s10, %s333_s10 }
   0xa   :  { %416 = vmatprep.subr.bf16.mxu0 %v463_v2  ;;  %v346_v39 = vld [vmem:[%s580_s4] ss:$0 sm:$0xff]  ;;  %p445_p2 = scmp.lt.s32.totalorder %s439_s11, %s439_s11 }
   0xc   :  { %412 = vmatpush3.bf16.msra.mxu1 %v411_v11  ;;  %p446_p3 = por %p445_p2, %p444_p1 }
   0xd   :  { %418 = vmatpush3.bf16.msra.mxu0 %v417_v22 }
   0xe   :  { %419 = vmatprep.subr.bf16.mxu0 %v463_v2  ;;  %p447_p4 = pnand %p446_p3, %p440_p0 }
  0x11   :  { %421 = vmatpush3.bf16.msra.mxu0 %v420_v25 }
  0x12   :  { %422 = vmatprep.subr.bf16.mxu0 %v463_v2 }
  0x15   :  { %424 = vmatpush3.bf16.msra.mxu0 %v423_v28 }
  0x77   :  { %v284_v38 = vpop.permute.xlu0 %283 }
  0x78   :  { %v286_v40 = vmul.f32 %v346_v39, %v284_v38 }
  0xda   :  { %v116_v16 = vpop.f32.mrb[0].mxu1 }
  0xdb   :  { %v117_v17 = vadd.f32 %v340_v15, %v116_v16  ;;  %v373_v18 = vpop.f32.mrb[1].mxu1 }
  0xdd   :  { %433 = vtanh.f32 %v117_v17 }
  0xe7   :  { %v434_v19 = vpop.eup %433 }
  0xe8   :  { %383 = vmatmul.mubr.msk.f32.vlgmr.msra.gmra.mrb[2].mxu1 %vm125_vm2, %v434_v19 }
 0x1bb   :  { %v195_v30 = vpop.f32.mrb[2].mxu1 }
 0x1bc   :  { %v196_v31 = vadd.f32 %v342_v29, %v195_v30  ;;  %v384_v32 = vpop.f32.mrb[3].mxu1 }
 0x1be   :  { %435 = vtanh.f32 %v196_v31 }
 0x1c8   :  { %v436_v33 = vpop.eup %435 }
 0x1c9   :  { %402 = vmatmul.mubr.msk.f32.vlgmr.msra.gmra.mrb[0].mxu0 %vm204_vm3, %v436_v33 }
 0x29c   :  { %v274_v35 = vpop.f32.mrb[0].mxu0 }
 0x29d   :  { %v275_v36 = vadd.f32 %v344_v34, %v274_v35  ;;  %v403_v37 = vpop.f32.mrb[1].mxu0 }
 0x29f   :  { %437 = vtanh.f32 %v275_v36 }
 0x2a9   :  { %v438_v41 = vpop.eup %437 }
 0x2aa   :  { %v287_v42 = vadd.f32 %v438_v41, %v286_v40  ;;  %309 = vrot.lane.b32.xlu1 %v438_v41, %s467_s2 }
 0x2ac   :  { %v347_v43 = vclamps-f32 %v287_v42, 1.0 }
 0x2ae   :  { %v290_v44 = vsub.f32 %v347_v43, %v438_v41  ;;  %307 = vst.msk [vmem:[#allocation2] sm:$0xff] %vm297_vm4, %v347_v43 }
 0x2b0   :  { %v291_v46 = vmul.f32 %v290_v44, %v290_v44 }
 0x2b2   :  { %v296_v47 = vmul.f32 %v348_v45, %v291_v46 }
 0x2b4   :  { %v298_v48 = vsel %vm297_vm4, %v296_v47, 0.0 }
 0x2b5   :  { %299 = vadd.xlane.f32.xlu0 %v298_v48 }
 0x31c   :  { %v310_v49 = vpop.permute.xlu1 %309 }
 0x31d   :  { %313 = vst.msk [vmem:[#allocation2] sm:$0xff] %vm312_vm5, %v310_v49 }
 0x342   :  { %v300_v51 = vpop.xlane.xlu0 %299 }
 0x343   :  { %v301_v52 = vsub.f32 0.0, %v300_v51 }
 0x345   :  { %v306_v53 = vsub.f32 %v301_v52, %v349_v50 }
 0x347   :  { %315 = vrot.lane.b32.xlu1 %v306_v53, %s468_s7 }
 0x34b   :  { %321 = vrot.lane.b32.xlu1 %v275_v36, %s469_s8 }
 0x3b9   :  { %v316_v54 = vpop.permute.xlu1 %315 }
 0x3ba   :  { %319 = vst.msk [vmem:[#allocation2] sm:$0xff] %vm318_vm6, %v316_v54 }
 0x3bd   :  { %v322_v55 = vpop.permute.xlu1 %321 }
 0x3be   :  { %325 = vst.msk [vmem:[#allocation2] sm:$0xff] %vm324_vm7, %v322_v55 }
 0x3bf   :  { %450 = shalt.err (!%p447_p4)
}
 0x3c0   :  { %s451_s13 = scalar_lea.hbm %s581_s5, 128 }
 0x3c1   :  { %p452_p5 = scmp.ne.s32.totalorder %s581_s5, %s451_s13  ;;  %p455_p6 = scmp.lt.u32.totalorder %s451_s13, %s581_s5 }
 0x3c3   :  { %p457_p7 = pnand %p455_p6, %p452_p5 }
 0x3c5   :  { %460 = shalt.err (!%p457_p7)
}
 0x3c6   :  { %335 = dma.vmem_to_hbm [thread:$0]  %s333_s10, 128, %s581_s5, [#allocation3]  }
 0x3c7   :  { %461 = dma.done.wait [#allocation3], 128  }
 0x3c8   :  { %462 = vsyncadd [#allocation3], 4294967168 }
 0x3c9   :  { %339 = vsyncpa [#allocation3], 1 }

</bundles_post_ra>
